<compile_context>
chip_gen: v7x
topology: tpu7x:2x2x1
jax: 0.10.0
libtpu: 0.0.40
codegen_flags: <defaults>
</compile_context>

<pallas_src>
import functools

import jax
import jax.numpy as jnp
from jax.experimental import pallas as pl
from jax.experimental.pallas import tpu as pltpu


# ----------------------------- Pallas kernel ------------------------------- #

def _fused_block_kernel(x_ref, w1_ref, b1_ref, w2_ref, b2_ref, ws_ref, bs_ref,
                        o_ref, xpad_ref, hpad_ref, col_ref,
                        *, H, W, Cin, Cmid, Cout):
    """Whole TransposeBasicBlock4d for one batch element.

    Layout: channels on sublanes, flattened spatial H*W on lanes.

      x_ref   : (1, Cin, HW)       input tile (NCHW with H,W merged)
      w1_ref  : (Cmid, 9*Cin)      conv1 taps, bn1 scale folded in
      b1_ref  : (Cmid, 1)          bn1 folded bias
      w2_ref  : (Cout, 9*Cmid)     conv2 taps, bn2 scale folded in
      b2_ref  : (Cout, 1)          bn2 folded bias
      ws_ref  : (Cout, Cin)        1x1 shortcut weight, bn_s scale folded in
      bs_ref  : (Cout, 1)          bn_s folded bias
      o_ref   : (1, Cout, HW)
    scratch (VMEM, persists across grid steps):
      xpad_ref: (Cin,  HW + 4*W)   zero-padded flattened x
      hpad_ref: (Cmid, HW + 4*W)   zero-padded flattened conv1 activation
      col_ref : (9*max(Cin,Cmid), HW)  im2col matrix
    """
    HW = H * W
    PAD = 2 * W                      # flattened pad per side (needs >= W + 1)

    # Column index of each output pixel (per lane); masks the width wrap-around
    # of the flattened shifted-slice trick so it matches zero padding in W.
    col_pos = jax.lax.broadcasted_iota(jnp.int32, (1, HW), 1) % W
    not_left = col_pos != 0
    not_right = col_pos != (W - 1)

    def im2col(pad_ref, C):
        # 9 shifted, edge-masked copies of the padded image -> rows of col_ref.
        for kh in range(3):
            for kw in range(3):
                dh, dw = kh - 1, kw - 1
                start = PAD + dh * W + dw              # static lane offset
                patch = pad_ref[:, start:start + HW]   # (C, HW)
                if dw == -1:
                    patch = jnp.where(not_left, patch, 0.0)
                elif dw == 1:
                    patch = jnp.where(not_right, patch, 0.0)
                tap = kh * 3 + kw
                col_ref[tap * C:(tap + 1) * C, :] = patch

    x = x_ref[0]                                       # (Cin, HW)

    # ---- conv1 (ConvT 3x3, s=1, p=1 == SAME correlation) + bn1 + relu ----
    xpad_ref[...] = jnp.zeros_like(xpad_ref)
    xpad_ref[:, PAD:PAD + HW] = x
    im2col(xpad_ref, Cin)
    h1 = jnp.dot(w1_ref[...], col_ref[0:9 * Cin, :],
                 preferred_element_type=jnp.float32)   # (Cmid, HW)
    h1 = jnp.maximum(h1 + b1_ref[...], 0.0)

    # ---- conv2 + bn2 (activation stays in VMEM; no HBM round trip) ----
    hpad_ref[...] = jnp.zeros_like(hpad_ref)
    hpad_ref[:, PAD:PAD + HW] = h1
    im2col(hpad_ref, Cmid)
    main = jnp.dot(w2_ref[...], col_ref[0:9 * Cmid, :],
                   preferred_element_type=jnp.float32) + b2_ref[...]

    # ---- 1x1 shortcut conv + bn_s (in_planes != planes configuration) ----
    sc = jnp.dot(ws_ref[...], x, preferred_element_type=jnp.float32) + bs_ref[...]

    # Lane-dense store: last dim HW (multiple of 128), unmasked vst.
    o_ref[...] = jnp.maximum(main + sc, 0.0)[None]


# ------------------------------ JAX wrapper -------------------------------- #

def _fold_bn(gamma, beta, mean, var, eps=1e-5):
    scale = gamma / jnp.sqrt(var + eps)
    bias = beta - mean * scale
    return scale, bias


def _convT3x3_to_taps(w_t):
    """ConvTranspose2d weight (Cin, Cout, 3, 3) -> per-tap correlation weights
    (3, 3, Cin, Cout): stride=1/pad=1 transpose-conv == SAME correlation with
    the spatially flipped kernel and swapped channel axes."""
    return jnp.transpose(jnp.flip(w_t, axis=(2, 3)), (2, 3, 0, 1))


def transpose_basic_block_4d(x_nchw, params):
    """Forward pass of TransposeBasicBlock4d. x_nchw: (N, Cin, H, W) float32."""
    N, Cin, H, W = x_nchw.shape
    Cmid = params["w1_t"].shape[1]    # planes
    Cout = params["w2_t"].shape[1]    # planes * expansion (= planes)
    HW = H * W

    # NCHW with H,W flattened IS the kernel's lane-dense layout: no transposes,
    # no pads, no intermediate HBM traffic in the wrapper (reshape is free).
    x = x_nchw.reshape(N, Cin, HW).astype(jnp.float32)

    s1, b1 = _fold_bn(*params["bn1"])
    s2, b2 = _fold_bn(*params["bn2"])
    ss, bs = _fold_bn(*params["bns"])

    # Fold the eval-mode BN scale into the conv weights; arrange taps as
    # (Cout, 9*Cin) matching the kernel's im2col row order (kh, kw, ci).
    w1_taps = _convT3x3_to_taps(params["w1_t"])                     # (3,3,Cin,Cmid)
    w2_taps = _convT3x3_to_taps(params["w2_t"])                     # (3,3,Cmid,Cout)
    w1_mat = jnp.transpose(w1_taps, (3, 0, 1, 2)).reshape(Cmid, 9 * Cin) * s1[:, None]
    w2_mat = jnp.transpose(w2_taps, (3, 0, 1, 2)).reshape(Cout, 9 * Cmid) * s2[:, None]
    ws_mat = params["ws_t"][:, :, 0, 0].T * ss[:, None]             # (Cout, Cin)

    b1v = b1.reshape(Cmid, 1)
    b2v = b2.reshape(Cout, 1)
    bsv = bs.reshape(Cout, 1)

    # TODO(synk): for production feature-map sizes, add a second 'parallel'
    # grid axis tiling H (1-row halo) so v7x's two TensorCores both get work at
    # small N and the per-step VMEM footprint stays under its 64 MiB; on
    # v5e/v6e optionally cast activations/weights to bf16 for the MXU.
    out = pl.pallas_call(
        functools.partial(_fused_block_kernel, H=H, W=W,
                          Cin=Cin, Cmid=Cmid, Cout=Cout),
        out_shape=jax.ShapeDtypeStruct((N, Cout, HW), jnp.float32),
        grid=(N,),
        in_specs=[
            pl.BlockSpec((1, Cin, HW), lambda n: (n, 0, 0)),
            pl.BlockSpec((Cmid, 9 * Cin), lambda n: (0, 0)),
            pl.BlockSpec((Cmid, 1), lambda n: (0, 0)),
            pl.BlockSpec((Cout, 9 * Cmid), lambda n: (0, 0)),
            pl.BlockSpec((Cout, 1), lambda n: (0, 0)),
            pl.BlockSpec((Cout, Cin), lambda n: (0, 0)),
            pl.BlockSpec((Cout, 1), lambda n: (0, 0)),
        ],
        out_specs=pl.BlockSpec((1, Cout, HW), lambda n: (n, 0, 0)),
        scratch_shapes=[
            pltpu.VMEM((Cin, HW + 4 * W), jnp.float32),
            pltpu.VMEM((Cmid, HW + 4 * W), jnp.float32),
            pltpu.VMEM((9 * max(Cin, Cmid), HW), jnp.float32),
        ],
        compiler_params=pltpu.CompilerParams(dimension_semantics=("parallel",)),
    )(x, w1_mat, b1v, w2_mat, b2v, ws_mat, bsv)

    return out.reshape(N, Cout, H, W)


# --------------------------- pure-JAX reference ----------------------------- #

def _ref_forward(x_nchw, params):
    x = jnp.transpose(x_nchw, (0, 2, 3, 1)).astype(jnp.float32)
    w1_taps = _convT3x3_to_taps(params["w1_t"])
    w2_taps = _convT3x3_to_taps(params["w2_t"])
    ws = params["ws_t"][:, :, 0, 0]
    s1, b1 = _fold_bn(*params["bn1"])
    s2, b2 = _fold_bn(*params["bn2"])
    ss, bs = _fold_bn(*params["bns"])

    def conv3(xin, wt):
        H, W = xin.shape[1], xin.shape[2]
        xp = jnp.pad(xin, ((0, 0), (1, 1), (1, 1), (0, 0)))
        acc = 0.0
        for kh in range(3):
            for kw in range(3):
                acc = acc + jnp.einsum('nhwc,co->nhwo',
                                       xp[:, kh:kh + H, kw:kw + W, :], wt[kh, kw])
        return acc

    out1 = jnp.maximum(conv3(x, w1_taps) * s1 + b1, 0.0)
    main = conv3(out1, w2_taps) * s2 + b2
    sc = jnp.einsum('nhwc,co->nhwo', x, ws) * ss + bs
    out = jnp.maximum(main + sc, 0.0)
    return jnp.transpose(out, (0, 3, 1, 2))


# ---------------------------------- main ------------------------------------ #

if __name__ == "__main__":
    N, in_planes, planes, H, W = 2, 4, 8, 16, 16

    key = jax.random.PRNGKey(0)
    ks = jax.random.split(key, 16)

    def bn_params(k, c):
        k1, k2, k3, k4 = jax.random.split(k, 4)
        gamma = 1.0 + 0.1 * jax.random.normal(k1, (c,), jnp.float32)
        beta = 0.1 * jax.random.normal(k2, (c,), jnp.float32)
        mean = 0.1 * jax.random.normal(k3, (c,), jnp.float32)
        var = jax.random.uniform(k4, (c,), jnp.float32, 0.5, 1.5)
        return (gamma, beta, mean, var)

    params = {
        # ConvTranspose2d weights are (in_channels, out_channels, kH, kW)
        "w1_t": 0.1 * jax.random.normal(ks[0], (in_planes, planes, 3, 3), jnp.float32),
        "w2_t": 0.1 * jax.random.normal(ks[1], (planes, planes, 3, 3), jnp.float32),
        "ws_t": 0.1 * jax.random.normal(ks[2], (in_planes, planes, 1, 1), jnp.float32),
        "bn1": bn_params(ks[3], planes),
        "bn2": bn_params(ks[4], planes),
        "bns": bn_params(ks[5], planes),
    }

    x = jax.random.normal(ks[6], (N, in_planes, H, W), jnp.float32)

    out = jax.block_until_ready(transpose_basic_block_4d(x, params))
    ref = jax.block_until_ready(_ref_forward(x, params))

    assert out.shape == (N, planes, H, W), out.shape
    assert jnp.allclose(out, ref, rtol=1e-4, atol=1e-4), float(jnp.max(jnp.abs(out - ref)))
    print("KERNEL_OK")
</pallas_src>

<mosaic_0001>
module attributes {stable_mosaic.version = 11 : i64} {
  func.func @_fused_block_kernel(%arg0: i32, %arg1: memref<1x4x256xf32, #tpu.memory_space<vmem>>, %arg2: memref<8x36xf32, #tpu.memory_space<vmem>>, %arg3: memref<8x1xf32, #tpu.memory_space<vmem>>, %arg4: memref<8x72xf32, #tpu.memory_space<vmem>>, %arg5: memref<8x1xf32, #tpu.memory_space<vmem>>, %arg6: memref<8x4xf32, #tpu.memory_space<vmem>>, %arg7: memref<8x1xf32, #tpu.memory_space<vmem>>, %arg8: memref<1x8x256xf32, #tpu.memory_space<vmem>>, %arg9: memref<4x320xf32, #tpu.memory_space<vmem>>, %arg10: memref<8x320xf32, #tpu.memory_space<vmem>>, %arg11: memref<72x256xf32, #tpu.memory_space<vmem>>) attributes {dimension_semantics = [#tpu.dimension_semantics<parallel>], iteration_bounds = array<i64: 2>, scalar_prefetch = 0 : i64, scratch_operands = 3 : i64, tpu.core_type = #tpu.core_type<tc>, window_params = [{transform_indices = @transform_0, window_bounds = array<i64: 1, 4, 256>}, {pipeline_mode = #tpu.pipeline_mode<synchronous>, transform_indices = @transform_1, window_bounds = array<i64: 8, 36>}, {pipeline_mode = #tpu.pipeline_mode<synchronous>, transform_indices = @transform_2, window_bounds = array<i64: 8, 1>}, {pipeline_mode = #tpu.pipeline_mode<synchronous>, transform_indices = @transform_3, window_bounds = array<i64: 8, 72>}, {pipeline_mode = #tpu.pipeline_mode<synchronous>, transform_indices = @transform_4, window_bounds = array<i64: 8, 1>}, {pipeline_mode = #tpu.pipeline_mode<synchronous>, transform_indices = @transform_5, window_bounds = array<i64: 8, 4>}, {pipeline_mode = #tpu.pipeline_mode<synchronous>, transform_indices = @transform_6, window_bounds = array<i64: 8, 1>}, {transform_indices = @transform_7, window_bounds = array<i64: 1, 8, 256>}]} {
    %0 = tpu.iota {dimensions = array<i32: 1>} : vector<1x256xi32>
    %c16_i32 = arith.constant 16 : i32
    %c0_i32 = arith.constant 0 : i32
    %1 = arith.cmpi eq, %c16_i32, %c0_i32 : i32
    %c1_i32 = arith.constant 1 : i32
    %2 = arith.select %1, %c1_i32, %c16_i32 : i32
    %3 = vector.broadcast %2 : i32 to vector<1x256xi32>
    %4 = arith.remsi %0, %3 : vector<1x256xi32>
    %c0_i32_0 = arith.constant 0 : i32
    %5 = vector.broadcast %c0_i32_0 : i32 to vector<1x256xi32>
    %6 = arith.cmpi ne, %4, %5 : vector<1x256xi32>
    %c0_i32_1 = arith.constant 0 : i32
    %7 = vector.broadcast %c0_i32_1 : i32 to vector<1x256xi32>
    %8 = arith.cmpi slt, %4, %7 : vector<1x256xi32>
    %c0_i32_2 = arith.constant 0 : i32
    %9 = arith.cmpi slt, %2, %c0_i32_2 : i32
    %10 = vector.broadcast %9 : i1 to vector<1x256xi1>
    %11 = vector.broadcast %10 : vector<1x256xi1> to vector<1x256xi1>
    %12 = arith.xori %8, %11 : vector<1x256xi1>
    %13 = arith.andi %12, %6 : vector<1x256xi1>
    %14 = vector.broadcast %2 : i32 to vector<1x256xi32>
    %15 = arith.addi %4, %14 : vector<1x256xi32>
    %16 = arith.select %13, %15, %4 : vector<1x256xi1>, vector<1x256xi32>
    %c0_i32_3 = arith.constant 0 : i32
    %17 = vector.broadcast %c0_i32_3 : i32 to vector<1x256xi32>
    %18 = arith.cmpi ne, %16, %17 : vector<1x256xi32>
    %c15_i32 = arith.constant 15 : i32
    %19 = vector.broadcast %c15_i32 : i32 to vector<1x256xi32>
    %20 = arith.cmpi ne, %16, %19 : vector<1x256xi32>
    %c0 = arith.constant 0 : index
    %c0_4 = arith.constant 0 : index
    %c0_5 = arith.constant 0 : index
    %21 = vector.load %arg1[%c0, %c0_4, %c0_5] : memref<1x4x256xf32, #tpu.memory_space<vmem>>, vector<1x4x256xf32>
    %22 = vector.shape_cast %21 : vector<1x4x256xf32> to vector<4x256xf32>
    %cst = arith.constant 0.000000e+00 : f32
    %23 = vector.broadcast %cst : f32 to vector<4x320xf32>
    %c0_6 = arith.constant 0 : index
    %c0_7 = arith.constant 0 : index
    %24 = vector.load %arg9[%c0_6, %c0_7] : memref<4x320xf32, #tpu.memory_space<vmem>>, vector<4x320xf32>
    tpu.vector_store %arg9[%c0_6, %c0_7], %23 {strides = array<i32>} : memref<4x320xf32, #tpu.memory_space<vmem>>, vector<4x320xf32>,
    %c0_8 = arith.constant 0 : index
    %c32 = arith.constant 32 : index
    %25 = vector.load %arg9[%c0_8, %c32] : memref<4x320xf32, #tpu.memory_space<vmem>>, vector<4x256xf32>
    tpu.vector_store %arg9[%c0_8, %c32], %22 {strides = array<i32>} : memref<4x320xf32, #tpu.memory_space<vmem>>, vector<4x256xf32>,
    %c0_9 = arith.constant 0 : index
    %c15 = arith.constant 15 : index
    %26 = vector.load %arg9[%c0_9, %c15] : memref<4x320xf32, #tpu.memory_space<vmem>>, vector<4x256xf32>
    %cst_10 = arith.constant 0.000000e+00 : f32
    %27 = vector.shape_cast %18 : vector<1x256xi1> to vector<1x256xi1>
    %28 = vector.broadcast %27 : vector<1x256xi1> to vector<4x256xi1>
    %29 = vector.broadcast %cst_10 : f32 to vector<4x256xf32>
    %30 = arith.select %28, %26, %29 : vector<4x256xi1>, vector<4x256xf32>
    %c0_11 = arith.constant 0 : index
    %c0_12 = arith.constant 0 : index
    %31 = vector.load %arg11[%c0_11, %c0_12] : memref<72x256xf32, #tpu.memory_space<vmem>>, vector<4x256xf32>
    tpu.vector_store %arg11[%c0_11, %c0_12], %30 {strides = array<i32>} : memref<72x256xf32, #tpu.memory_space<vmem>>, vector<4x256xf32>,
    %c0_13 = arith.constant 0 : index
    %c16 = arith.constant 16 : index
    %32 = vector.load %arg9[%c0_13, %c16] : memref<4x320xf32, #tpu.memory_space<vmem>>, vector<4x256xf32>
    %c4 = arith.constant 4 : index
    %c0_14 = arith.constant 0 : index
    %33 = vector.load %arg11[%c4, %c0_14] : memref<72x256xf32, #tpu.memory_space<vmem>>, vector<4x256xf32>
    tpu.vector_store %arg11[%c4, %c0_14], %32 {strides = array<i32>} : memref<72x256xf32, #tpu.memory_space<vmem>>, vector<4x256xf32>,
    %c0_15 = arith.constant 0 : index
    %c17 = arith.constant 17 : index
    %34 = vector.load %arg9[%c0_15, %c17] : memref<4x320xf32, #tpu.memory_space<vmem>>, vector<4x256xf32>
    %cst_16 = arith.constant 0.000000e+00 : f32
    %35 = vector.shape_cast %20 : vector<1x256xi1> to vector<1x256xi1>
    %36 = vector.broadcast %35 : vector<1x256xi1> to vector<4x256xi1>
    %37 = vector.broadcast %cst_16 : f32 to vector<4x256xf32>
    %38 = arith.select %36, %34, %37 : vector<4x256xi1>, vector<4x256xf32>
    %c8 = arith.constant 8 : index
    %c0_17 = arith.constant 0 : index
    %39 = vector.load %arg11[%c8, %c0_17] : memref<72x256xf32, #tpu.memory_space<vmem>>, vector<4x256xf32>
    tpu.vector_store %arg11[%c8, %c0_17], %38 {strides = array<i32>} : memref<72x256xf32, #tpu.memory_space<vmem>>, vector<4x256xf32>,
    %c0_18 = arith.constant 0 : index
    %c31 = arith.constant 31 : index
    %40 = vector.load %arg9[%c0_18, %c31] : memref<4x320xf32, #tpu.memory_space<vmem>>, vector<4x256xf32>
    %cst_19 = arith.constant 0.000000e+00 : f32
    %41 = vector.shape_cast %18 : vector<1x256xi1> to vector<1x256xi1>
    %42 = vector.broadcast %41 : vector<1x256xi1> to vector<4x256xi1>
    %43 = vector.broadcast %cst_19 : f32 to vector<4x256xf32>
    %44 = arith.select %42, %40, %43 : vector<4x256xi1>, vector<4x256xf32>
    %c12 = arith.constant 12 : index
    %c0_20 = arith.constant 0 : index
    %45 = vector.load %arg11[%c12, %c0_20] : memref<72x256xf32, #tpu.memory_space<vmem>>, vector<4x256xf32>
    tpu.vector_store %arg11[%c12, %c0_20], %44 {strides = array<i32>} : memref<72x256xf32, #tpu.memory_space<vmem>>, vector<4x256xf32>,
    %c0_21 = arith.constant 0 : index
    %c32_22 = arith.constant 32 : index
    %46 = vector.load %arg9[%c0_21, %c32_22] : memref<4x320xf32, #tpu.memory_space<vmem>>, vector<4x256xf32>
    %c16_23 = arith.constant 16 : index
    %c0_24 = arith.constant 0 : index
    %47 = vector.load %arg11[%c16_23, %c0_24] : memref<72x256xf32, #tpu.memory_space<vmem>>, vector<4x256xf32>
    tpu.vector_store %arg11[%c16_23, %c0_24], %46 {strides = array<i32>} : memref<72x256xf32, #tpu.memory_space<vmem>>, vector<4x256xf32>,
    %c0_25 = arith.constant 0 : index
    %c33 = arith.constant 33 : index
    %48 = vector.load %arg9[%c0_25, %c33] : memref<4x320xf32, #tpu.memory_space<vmem>>, vector<4x256xf32>
    %cst_26 = arith.constant 0.000000e+00 : f32
    %49 = vector.shape_cast %20 : vector<1x256xi1> to vector<1x256xi1>
    %50 = vector.broadcast %49 : vector<1x256xi1> to vector<4x256xi1>
    %51 = vector.broadcast %cst_26 : f32 to vector<4x256xf32>
    %52 = arith.select %50, %48, %51 : vector<4x256xi1>, vector<4x256xf32>
    %c20 = arith.constant 20 : index
    %c0_27 = arith.constant 0 : index
    %53 = vector.load %arg11[%c20, %c0_27] : memref<72x256xf32, #tpu.memory_space<vmem>>, vector<4x256xf32>
    tpu.vector_store %arg11[%c20, %c0_27], %52 {strides = array<i32>} : memref<72x256xf32, #tpu.memory_space<vmem>>, vector<4x256xf32>,
    %c0_28 = arith.constant 0 : index
    %c47 = arith.constant 47 : index
    %54 = vector.load %arg9[%c0_28, %c47] : memref<4x320xf32, #tpu.memory_space<vmem>>, vector<4x256xf32>
    %cst_29 = arith.constant 0.000000e+00 : f32
    %55 = vector.shape_cast %18 : vector<1x256xi1> to vector<1x256xi1>
    %56 = vector.broadcast %55 : vector<1x256xi1> to vector<4x256xi1>
    %57 = vector.broadcast %cst_29 : f32 to vector<4x256xf32>
    %58 = arith.select %56, %54, %57 : vector<4x256xi1>, vector<4x256xf32>
    %c24 = arith.constant 24 : index
    %c0_30 = arith.constant 0 : index
    %59 = vector.load %arg11[%c24, %c0_30] : memref<72x256xf32, #tpu.memory_space<vmem>>, vector<4x256xf32>
    tpu.vector_store %arg11[%c24, %c0_30], %58 {strides = array<i32>} : memref<72x256xf32, #tpu.memory_space<vmem>>, vector<4x256xf32>,
    %c0_31 = arith.constant 0 : index
    %c48 = arith.constant 48 : index
    %60 = vector.load %arg9[%c0_31, %c48] : memref<4x320xf32, #tpu.memory_space<vmem>>, vector<4x256xf32>
    %c28 = arith.constant 28 : index
    %c0_32 = arith.constant 0 : index
    %61 = vector.load %arg11[%c28, %c0_32] : memref<72x256xf32, #tpu.memory_space<vmem>>, vector<4x256xf32>
    tpu.vector_store %arg11[%c28, %c0_32], %60 {strides = array<i32>} : memref<72x256xf32, #tpu.memory_space<vmem>>, vector<4x256xf32>,
    %c0_33 = arith.constant 0 : index
    %c49 = arith.constant 49 : index
    %62 = vector.load %arg9[%c0_33, %c49] : memref<4x320xf32, #tpu.memory_space<vmem>>, vector<4x256xf32>
    %cst_34 = arith.constant 0.000000e+00 : f32
    %63 = vector.shape_cast %20 : vector<1x256xi1> to vector<1x256xi1>
    %64 = vector.broadcast %63 : vector<1x256xi1> to vector<4x256xi1>
    %65 = vector.broadcast %cst_34 : f32 to vector<4x256xf32>
    %66 = arith.select %64, %62, %65 : vector<4x256xi1>, vector<4x256xf32>
    %c32_35 = arith.constant 32 : index
    %c0_36 = arith.constant 0 : index
    %67 = vector.load %arg11[%c32_35, %c0_36] : memref<72x256xf32, #tpu.memory_space<vmem>>, vector<4x256xf32>
    tpu.vector_store %arg11[%c32_35, %c0_36], %66 {strides = array<i32>} : memref<72x256xf32, #tpu.memory_space<vmem>>, vector<4x256xf32>,
    %c0_37 = arith.constant 0 : index
    %c0_38 = arith.constant 0 : index
    %68 = vector.load %arg2[%c0_37, %c0_38] : memref<8x36xf32, #tpu.memory_space<vmem>>, vector<8x36xf32>
    %c0_39 = arith.constant 0 : index
    %c0_40 = arith.constant 0 : index
    %69 = vector.load %arg11[%c0_39, %c0_40] : memref<72x256xf32, #tpu.memory_space<vmem>>, vector<36x256xf32>
    %cst_41 = arith.constant dense<0.000000e+00> : vector<8x256xf32>
    %70 = tpu.matmul %68, %69, %cst_41 {dimension_numbers = #tpu.dot_dimension_numbers<[1], [0], [0], [1], [0, 0, 1, 1], [], []>} : vector<8x36xf32>, vector<36x256xf32>, vector<8x256xf32> -> vector<8x256xf32>
    %c0_42 = arith.constant 0 : index
    %c0_43 = arith.constant 0 : index
    %71 = vector.load %arg3[%c0_42, %c0_43] : memref<8x1xf32, #tpu.memory_space<vmem>>, vector<8x1xf32>
    %72 = vector.broadcast %71 : vector<8x1xf32> to vector<8x256xf32>
    %73 = arith.addf %70, %72 : vector<8x256xf32>
    %cst_44 = arith.constant 0.000000e+00 : f32
    %74 = vector.broadcast %cst_44 : f32 to vector<8x256xf32>
    %75 = arith.maximumf %73, %74 : vector<8x256xf32>
    %cst_45 = arith.constant 0.000000e+00 : f32
    %76 = vector.broadcast %cst_45 : f32 to vector<8x320xf32>
    %c0_46 = arith.constant 0 : index
    %c0_47 = arith.constant 0 : index
    %77 = vector.load %arg10[%c0_46, %c0_47] : memref<8x320xf32, #tpu.memory_space<vmem>>, vector<8x320xf32>
    tpu.vector_store %arg10[%c0_46, %c0_47], %76 {strides = array<i32>} : memref<8x320xf32, #tpu.memory_space<vmem>>, vector<8x320xf32>,
    %c0_48 = arith.constant 0 : index
    %c32_49 = arith.constant 32 : index
    %78 = vector.load %arg10[%c0_48, %c32_49] : memref<8x320xf32, #tpu.memory_space<vmem>>, vector<8x256xf32>
    tpu.vector_store %arg10[%c0_48, %c32_49], %75 {strides = array<i32>} : memref<8x320xf32, #tpu.memory_space<vmem>>, vector<8x256xf32>,
    %c0_50 = arith.constant 0 : index
    %c15_51 = arith.constant 15 : index
    %79 = vector.load %arg10[%c0_50, %c15_51] : memref<8x320xf32, #tpu.memory_space<vmem>>, vector<8x256xf32>
    %cst_52 = arith.constant 0.000000e+00 : f32
    %80 = vector.shape_cast %18 : vector<1x256xi1> to vector<1x256xi1>
    %81 = vector.broadcast %80 : vector<1x256xi1> to vector<8x256xi1>
    %82 = vector.broadcast %cst_52 : f32 to vector<8x256xf32>
    %83 = arith.select %81, %79, %82 : vector<8x256xi1>, vector<8x256xf32>
    %c0_53 = arith.constant 0 : index
    %c0_54 = arith.constant 0 : index
    %84 = vector.load %arg11[%c0_53, %c0_54] : memref<72x256xf32, #tpu.memory_space<vmem>>, vector<8x256xf32>
    tpu.vector_store %arg11[%c0_53, %c0_54], %83 {strides = array<i32>} : memref<72x256xf32, #tpu.memory_space<vmem>>, vector<8x256xf32>,
    %c0_55 = arith.constant 0 : index
    %c16_56 = arith.constant 16 : index
    %85 = vector.load %arg10[%c0_55, %c16_56] : memref<8x320xf32, #tpu.memory_space<vmem>>, vector<8x256xf32>
    %c8_57 = arith.constant 8 : index
    %c0_58 = arith.constant 0 : index
    %86 = vector.load %arg11[%c8_57, %c0_58] : memref<72x256xf32, #tpu.memory_space<vmem>>, vector<8x256xf32>
    tpu.vector_store %arg11[%c8_57, %c0_58], %85 {strides = array<i32>} : memref<72x256xf32, #tpu.memory_space<vmem>>, vector<8x256xf32>,
    %c0_59 = arith.constant 0 : index
    %c17_60 = arith.constant 17 : index
    %87 = vector.load %arg10[%c0_59, %c17_60] : memref<8x320xf32, #tpu.memory_space<vmem>>, vector<8x256xf32>
    %cst_61 = arith.constant 0.000000e+00 : f32
    %88 = vector.shape_cast %20 : vector<1x256xi1> to vector<1x256xi1>
    %89 = vector.broadcast %88 : vector<1x256xi1> to vector<8x256xi1>
    %90 = vector.broadcast %cst_61 : f32 to vector<8x256xf32>
    %91 = arith.select %89, %87, %90 : vector<8x256xi1>, vector<8x256xf32>
    %c16_62 = arith.constant 16 : index
    %c0_63 = arith.constant 0 : index
    %92 = vector.load %arg11[%c16_62, %c0_63] : memref<72x256xf32, #tpu.memory_space<vmem>>, vector<8x256xf32>
    tpu.vector_store %arg11[%c16_62, %c0_63], %91 {strides = array<i32>} : memref<72x256xf32, #tpu.memory_space<vmem>>, vector<8x256xf32>,
    %c0_64 = arith.constant 0 : index
    %c31_65 = arith.constant 31 : index
    %93 = vector.load %arg10[%c0_64, %c31_65] : memref<8x320xf32, #tpu.memory_space<vmem>>, vector<8x256xf32>
    %cst_66 = arith.constant 0.000000e+00 : f32
    %94 = vector.shape_cast %18 : vector<1x256xi1> to vector<1x256xi1>
    %95 = vector.broadcast %94 : vector<1x256xi1> to vector<8x256xi1>
    %96 = vector.broadcast %cst_66 : f32 to vector<8x256xf32>
    %97 = arith.select %95, %93, %96 : vector<8x256xi1>, vector<8x256xf32>
    %c24_67 = arith.constant 24 : index
    %c0_68 = arith.constant 0 : index
    %98 = vector.load %arg11[%c24_67, %c0_68] : memref<72x256xf32, #tpu.memory_space<vmem>>, vector<8x256xf32>
    tpu.vector_store %arg11[%c24_67, %c0_68], %97 {strides = array<i32>} : memref<72x256xf32, #tpu.memory_space<vmem>>, vector<8x256xf32>,
    %c0_69 = arith.constant 0 : index
    %c32_70 = arith.constant 32 : index
    %99 = vector.load %arg10[%c0_69, %c32_70] : memref<8x320xf32, #tpu.memory_space<vmem>>, vector<8x256xf32>
    %c32_71 = arith.constant 32 : index
    %c0_72 = arith.constant 0 : index
    %100 = vector.load %arg11[%c32_71, %c0_72] : memref<72x256xf32, #tpu.memory_space<vmem>>, vector<8x256xf32>
    tpu.vector_store %arg11[%c32_71, %c0_72], %99 {strides = array<i32>} : memref<72x256xf32, #tpu.memory_space<vmem>>, vector<8x256xf32>,
    %c0_73 = arith.constant 0 : index
    %c33_74 = arith.constant 33 : index
    %101 = vector.load %arg10[%c0_73, %c33_74] : memref<8x320xf32, #tpu.memory_space<vmem>>, vector<8x256xf32>
    %cst_75 = arith.constant 0.000000e+00 : f32
    %102 = vector.shape_cast %20 : vector<1x256xi1> to vector<1x256xi1>
    %103 = vector.broadcast %102 : vector<1x256xi1> to vector<8x256xi1>
    %104 = vector.broadcast %cst_75 : f32 to vector<8x256xf32>
    %105 = arith.select %103, %101, %104 : vector<8x256xi1>, vector<8x256xf32>
    %c40 = arith.constant 40 : index
    %c0_76 = arith.constant 0 : index
    %106 = vector.load %arg11[%c40, %c0_76] : memref<72x256xf32, #tpu.memory_space<vmem>>, vector<8x256xf32>
    tpu.vector_store %arg11[%c40, %c0_76], %105 {strides = array<i32>} : memref<72x256xf32, #tpu.memory_space<vmem>>, vector<8x256xf32>,
    %c0_77 = arith.constant 0 : index
    %c47_78 = arith.constant 47 : index
    %107 = vector.load %arg10[%c0_77, %c47_78] : memref<8x320xf32, #tpu.memory_space<vmem>>, vector<8x256xf32>
    %cst_79 = arith.constant 0.000000e+00 : f32
    %108 = vector.shape_cast %18 : vector<1x256xi1> to vector<1x256xi1>
    %109 = vector.broadcast %108 : vector<1x256xi1> to vector<8x256xi1>
    %110 = vector.broadcast %cst_79 : f32 to vector<8x256xf32>
    %111 = arith.select %109, %107, %110 : vector<8x256xi1>, vector<8x256xf32>
    %c48_80 = arith.constant 48 : index
    %c0_81 = arith.constant 0 : index
    %112 = vector.load %arg11[%c48_80, %c0_81] : memref<72x256xf32, #tpu.memory_space<vmem>>, vector<8x256xf32>
    tpu.vector_store %arg11[%c48_80, %c0_81], %111 {strides = array<i32>} : memref<72x256xf32, #tpu.memory_space<vmem>>, vector<8x256xf32>,
    %c0_82 = arith.constant 0 : index
    %c48_83 = arith.constant 48 : index
    %113 = vector.load %arg10[%c0_82, %c48_83] : memref<8x320xf32, #tpu.memory_space<vmem>>, vector<8x256xf32>
    %c56 = arith.constant 56 : index
    %c0_84 = arith.constant 0 : index
    %114 = vector.load %arg11[%c56, %c0_84] : memref<72x256xf32, #tpu.memory_space<vmem>>, vector<8x256xf32>
    tpu.vector_store %arg11[%c56, %c0_84], %113 {strides = array<i32>} : memref<72x256xf32, #tpu.memory_space<vmem>>, vector<8x256xf32>,
    %c0_85 = arith.constant 0 : index
    %c49_86 = arith.constant 49 : index
    %115 = vector.load %arg10[%c0_85, %c49_86] : memref<8x320xf32, #tpu.memory_space<vmem>>, vector<8x256xf32>
    %cst_87 = arith.constant 0.000000e+00 : f32
    %116 = vector.shape_cast %20 : vector<1x256xi1> to vector<1x256xi1>
    %117 = vector.broadcast %116 : vector<1x256xi1> to vector<8x256xi1>
    %118 = vector.broadcast %cst_87 : f32 to vector<8x256xf32>
    %119 = arith.select %117, %115, %118 : vector<8x256xi1>, vector<8x256xf32>
    %c64 = arith.constant 64 : index
    %c0_88 = arith.constant 0 : index
    %120 = vector.load %arg11[%c64, %c0_88] : memref<72x256xf32, #tpu.memory_space<vmem>>, vector<8x256xf32>
    tpu.vector_store %arg11[%c64, %c0_88], %119 {strides = array<i32>} : memref<72x256xf32, #tpu.memory_space<vmem>>, vector<8x256xf32>,
    %c0_89 = arith.constant 0 : index
    %c0_90 = arith.constant 0 : index
    %121 = vector.load %arg4[%c0_89, %c0_90] : memref<8x72xf32, #tpu.memory_space<vmem>>, vector<8x72xf32>
    %c0_91 = arith.constant 0 : index
    %c0_92 = arith.constant 0 : index
    %122 = vector.load %arg11[%c0_91, %c0_92] : memref<72x256xf32, #tpu.memory_space<vmem>>, vector<72x256xf32>
    %cst_93 = arith.constant dense<0.000000e+00> : vector<8x256xf32>
    %123 = tpu.matmul %121, %122, %cst_93 {dimension_numbers = #tpu.dot_dimension_numbers<[1], [0], [0], [1], [0, 0, 1, 1], [], []>} : vector<8x72xf32>, vector<72x256xf32>, vector<8x256xf32> -> vector<8x256xf32>
    %c0_94 = arith.constant 0 : index
    %c0_95 = arith.constant 0 : index
    %124 = vector.load %arg5[%c0_94, %c0_95] : memref<8x1xf32, #tpu.memory_space<vmem>>, vector<8x1xf32>
    %125 = vector.broadcast %124 : vector<8x1xf32> to vector<8x256xf32>
    %126 = arith.addf %123, %125 : vector<8x256xf32>
    %c0_96 = arith.constant 0 : index
    %c0_97 = arith.constant 0 : index
    %127 = vector.load %arg6[%c0_96, %c0_97] : memref<8x4xf32, #tpu.memory_space<vmem>>, vector<8x4xf32>
    %cst_98 = arith.constant dense<0.000000e+00> : vector<8x256xf32>
    %128 = tpu.matmul %127, %22, %cst_98 {dimension_numbers = #tpu.dot_dimension_numbers<[1], [0], [0], [1], [0, 0, 1, 1], [], []>} : vector<8x4xf32>, vector<4x256xf32>, vector<8x256xf32> -> vector<8x256xf32>
    %c0_99 = arith.constant 0 : index
    %c0_100 = arith.constant 0 : index
    %129 = vector.load %arg7[%c0_99, %c0_100] : memref<8x1xf32, #tpu.memory_space<vmem>>, vector<8x1xf32>
    %130 = vector.broadcast %129 : vector<8x1xf32> to vector<8x256xf32>
    %131 = arith.addf %128, %130 : vector<8x256xf32>
    %132 = arith.addf %126, %131 : vector<8x256xf32>
    %cst_101 = arith.constant 0.000000e+00 : f32
    %133 = vector.broadcast %cst_101 : f32 to vector<8x256xf32>
    %134 = arith.maximumf %132, %133 : vector<8x256xf32>
    %135 = vector.shape_cast %134 : vector<8x256xf32> to vector<1x8x256xf32>
    %c0_102 = arith.constant 0 : index
    %c0_103 = arith.constant 0 : index
    %c0_104 = arith.constant 0 : index
    %136 = vector.load %arg8[%c0_102, %c0_103, %c0_104] : memref<1x8x256xf32, #tpu.memory_space<vmem>>, vector<1x8x256xf32>
    tpu.vector_store %arg8[%c0_102, %c0_103, %c0_104], %135 {strides = array<i32>} : memref<1x8x256xf32, #tpu.memory_space<vmem>>, vector<1x8x256xf32>,
    return
  }
  func.func @transform_0(%arg0: i32) -> (i32, i32, i32) {
    %c0_i32 = arith.constant 0 : i32
    %c0_i32_0 = arith.constant 0 : i32
    %c0_i32_1 = arith.constant 0 : i32
    return %arg0, %c0_i32, %c0_i32_0 : i32, i32, i32
  }
  func.func @transform_1(%arg0: i32) -> (i32, i32) {
    %c0_i32 = arith.constant 0 : i32
    %c0_i32_0 = arith.constant 0 : i32
    %c0_i32_1 = arith.constant 0 : i32
    return %c0_i32, %c0_i32_0 : i32, i32
  }
  func.func @transform_2(%arg0: i32) -> (i32, i32) {
    %c0_i32 = arith.constant 0 : i32
    %c0_i32_0 = arith.constant 0 : i32
    %c0_i32_1 = arith.constant 0 : i32
    return %c0_i32, %c0_i32_0 : i32, i32
  }
  func.func @transform_3(%arg0: i32) -> (i32, i32) {
    %c0_i32 = arith.constant 0 : i32
    %c0_i32_0 = arith.constant 0 : i32
    %c0_i32_1 = arith.constant 0 : i32
    return %c0_i32, %c0_i32_0 : i32, i32
  }
  func.func @transform_4(%arg0: i32) -> (i32, i32) {
    %c0_i32 = arith.constant 0 : i32
    %c0_i32_0 = arith.constant 0 : i32
    %c0_i32_1 = arith.constant 0 : i32
    return %c0_i32, %c0_i32_0 : i32, i32
  }
  func.func @transform_5(%arg0: i32) -> (i32, i32) {
    %c0_i32 = arith.constant 0 : i32
    %c0_i32_0 = arith.constant 0 : i32
    %c0_i32_1 = arith.constant 0 : i32
    return %c0_i32, %c0_i32_0 : i32, i32
  }
  func.func @transform_6(%arg0: i32) -> (i32, i32) {
    %c0_i32 = arith.constant 0 : i32
    %c0_i32_0 = arith.constant 0 : i32
    %c0_i32_1 = arith.constant 0 : i32
    return %c0_i32, %c0_i32_0 : i32, i32
  }
  func.func @transform_7(%arg0: i32) -> (i32, i32, i32) {
    %c0_i32 = arith.constant 0 : i32
    %c0_i32_0 = arith.constant 0 : i32
    %c0_i32_1 = arith.constant 0 : i32
    return %arg0, %c0_i32, %c0_i32_0 : i32, i32, i32
  }
}

</mosaic_0001>

<bundles_post_ra>
// kernel: tpu_custom_call.1
= control target key start
LH: loop header
LB: loop body
LE: loop exit
PB: predicated region body
PF: predicated region fallthrough
CT: control target
= control target key end

     0   :  { %12 = vsyncpa [#allocation6], 0  ;;  %s1660_s0 = inlined_call_operand.vmem [shape: f32[2,4,256], index: 0, kind: input, shape index: {}]   ;;  %s1661_s1 = inlined_call_operand.vmem [shape: f32[8,36], index: 1, kind: input, shape index: {}]   ;;  %s1662_s2 = inlined_call_operand.vmem [shape: f32[8,1], index: 2, kind: input, shape index: {}]   ;;  %s1663_s3 = inlined_call_operand.vmem [shape: f32[8,72], index: 3, kind: input, shape index: {}]   ;;  %s1664_s4 = inlined_call_operand.vmem [shape: f32[8,1], index: 4, kind: input, shape index: {}]   ;;  %s1665_s5 = inlined_call_operand.vmem [shape: f32[8,4], index: 5, kind: input, shape index: {}]   ;;  %s1666_s6 = inlined_call_operand.vmem [shape: f32[8,1], index: 6, kind: input, shape index: {}]   ;;  %s1667_s7 = inlined_call_operand.hbm [shape: f32[2,8,256], index: 7, kind: output, shape index: {}]  }
   0x1   :  { %14 = vsyncpa [#allocation6 + $0x1], 0  ;;  %s1335_s24 = smov 0   ;;  %s1337_s25 = smov 0  }
   0x2   :  { %s1339_s26 = smov 0   ;;  %s1341_s27 = smov 0  }
   0x3 LB: > { %s1356_s28 = sadd.s32 4294967295, %s1279_s27   ;;  %s1082_s29 = sadd.s32 4294967294, %s1279_s27   ;;  %s1279_s27 = sphi %s1341_s27, %s1688_s27   ;;  %s1275_s26 = sphi %s1339_s26, %s1687_s26   ;;  %s1271_s25 = sphi %s1337_s25, %s1686_s25   ;;  %s1267_s24 = sphi %s1335_s24, %s1685_s24  }
   0x4   : > { %s1360_s30 = sadd.s32 1, %s1279_s27   ;;  %s179_s8 = sadd.s32 1, %s1275_s26 }
   0x5   : > { %s176_s9 = ssub.s32 %s1279_s27, %s1360_s30  ;;  %p189_p0 = scmp.ne.s32.totalorder %s1275_s26, %s1271_s25 }
   0x6   : > { %p177_p1 = scmp.eq.s32.totalorder %s176_s9, 0  ;;  %p190_p2 = scmp.eq.s32.totalorder %s1356_s28, 1 }
   0x7   : > { %p195_p3 = scmp.ne.s32.totalorder %s1271_s25, %s1267_s24  ;;  %p196_p4 = scmp.eq.s32.totalorder %s1082_s29, 1 }
   0x8   : > { %s1371_s10 = scalar_select %p177_p1, %s1275_s26, %s179_s8  }
   0x9   : > { %p1373_p5 = por %p190_p2, %p189_p0  ;;  %p1377_p6 = por %p196_p4, %p195_p3 }
   0xa   : > { %p1085_p7 = scmp.ge.s32.totalorder %s1279_s27, 1  ;;  %p240_p8 = scmp.lt.s32.totalorder %s1279_s27, 3 }
   0xc   : > { %p241_p9 = pnand %p1085_p7, %p240_p8 }
   0xd   : > { %p272_p10 = scmp.lt.s32.totalorder (!%p241_p9), %s1356_s28, 1  ;;  %vm310_vm0 = vcmask (!%p241_p9), 519168   ;;  %v1281_v0 = vmov (!%p241_p9), 0.0   ;;  %s1282_s18 = smov (!%p241_p9), 32   ;;  %vm320_vm1 = vcmask (!%p241_p9), 1043712   ;;  %vm321_vm2 = vcmask (!%p241_p9), 1047556  }
   0xe   : > { %244 = sbr.rel (%p241_p9) target bundleno = 1073 (0x431), region = 48  ;;  %309 = vst [vmem:[#allocation2] sm:$0xff] (!%p241_p9), %v1281_v0  ;;  %311 = vst.msk [vmem:[#allocation2 + $0x8] sm:$0xf] (!%p241_p9), %vm310_vm0, %v1281_v0  ;;  %614 = vmatprep.mubr.f32.mxu0 (!%p241_p9), %v1281_v0  ;;  %908 = vmatprep.mubr.f32.mxu1 (!%p241_p9), %v1281_v0  ;;  %vm316_vm3 = vcmask (!%p241_p9), 261120   ;;  %vm324_vm4 = vcmask (!%p241_p9), 257024   ;;  %v277_v21 = vlaneseq (!%p241_p9) }
   0xf   : > { %623 = vst [vmem:[#allocation3] sm:$0xff] (!%p241_p9), %v1281_v0  ;;  %vm322_vm5 = vmor (!%p241_p9), %vm321_vm2, %vm320_vm1  ;;  %s1283_s19 = smov (!%p241_p9), 95   ;;  %s1284_s20 = smov (!%p241_p9), 97   ;;  %v533_v17 = vld [vmem:[%s1662_s2] sm:$0xff] (!%p241_p9)  ;;  %v1292_v18 = vmov (!%p241_p9), 0   ;;  %vm404_vm6 = vcmask (!%p241_p9), 793600  }
  0x10   : > { %s1285_s21 = smov (!%p241_p9), 113   ;;  %s1286_s22 = smov (!%p241_p9), 111   ;;  %1184 = vset.pattern.permute.xlu0 (!%p241_p9), %v1292_v18  ;;  %1185 = vset.pattern.permute.xlu1 (!%p241_p9), %v1292_v18  ;;  %v278_v24 = vand.u32 (!%p241_p9), 127, %v277_v21  ;;  %vm362_vm9 = vcmask (!%p241_p9), 916480   ;;  %vm341_vm10 = vcmask (!%p241_p9), 924672   ;;  %vm384_vm11 = vcmask (!%p241_p9), 908288  }
  0x11   : > { %s1287_s23 = smov (!%p241_p9), 81   ;;  %s1288_s29 = smov (!%p241_p9), 112   ;;  %vm495_vm14 = vcmask (!%p241_p9), 654336   ;;  %vm474_vm15 = vcmask (!%p241_p9), 662528   ;;  %vm448_vm0 = vcmask (!%p241_p9), 777216   ;;  %vm430_vm1 = vcmask (!%p241_p9), 785408  }
  0x12   : > { %s1289_s8 = smov (!%p241_p9), 96   ;;  %s1290_s9 = smov (!%p241_p9), 80   ;;  %v279_v27 = vadd.s32 (!%p241_p9), 128, %v278_v24  ;;  %v284_v30 = vand.u32 (!%p241_p9), 15, %v278_v24  ;;  %vm1668_vm2 = vcmask (!%p241_p9), 646144  }
  0x14   : > { %v291_v31 = vand.u32 (!%p241_p9), 15, %v279_v27  ;;  %vm1432_vm7 = vcmp.ne.s32.totalorder (!%p241_p9), %v284_v30, 0  ;;  %vm1453_vm12 = vcmp.ne.s32.totalorder (!%p241_p9), %v284_v30, 15 }
  0x15   : > { %s273_s13 = scalar_select %p272_p10, %s1356_s28, 1 }
  0x16   : > { %vm1436_vm8 = vcmp.ne.s32.totalorder %v291_v31, 0  ;;  %vm1457_vm13 = vcmp.ne.s32.totalorder %v291_v31, 15 }
  0x17   : > { %s1101_s14 = sshll.u32 %s273_s13, 3  ;;  %s1291_s13 = smov 79  }
  0x18   : > { %s276_s17 = scalar_lea.vmem %s1660_s0, %s1101_s14  ;;  %s1102_s14 = sshll.u32 %s1356_s28, 8 }
  0x19   : > { %v1393_v1 = vld [vmem:[%s276_s17] sm:$0xff]  ;;  %s1294_s28 = smov [#allocation5]  }
  0x1a   : > { %313 = vrot.lane.b32.xlu0 %v1393_v1, %s1282_s18 }
  0x8c   : > { %v314_v2 = vpop.permute.xlu0 %313 }
  0x8d   : > { %v315_v3 = vrot.slane %v314_v2, 4 }
  0x8f   : > { %v317_v4 = vsel %vm316_vm3, %v315_v3, %v314_v2  ;;  %325 = vst.msk [vmem:[#allocation2 + $0x8] sm:$0xf] %vm324_vm4, %v315_v3  ;;  %vm543_vm4 = vcmask 1043456  }
  0x90   : > { %323 = vst.msk [vmem:[#allocation2] sm:$0xff] %vm322_vm5, %v317_v4  ;;  %vm539_vm5 = vcmask 293888  }
  0x96   : > { %v438_v5 = vld [vmem:[#allocation2 + $0x8] sm:$0xf] }
  0x97   : > { %v394_v6 = vld [vmem:[#allocation2 + $0x8] sm:$0xf]  ;;  %446 = vrot.lane.b32.xlu0 %v438_v5, %s1283_s19  ;;  %v326_v8 = vld [vmem:[#allocation2] sm:$0xff] }
  0x98   : > { %402 = vrot.lane.b32.xlu1 %v394_v6, %s1284_s20  ;;  %v327_v7 = vld [vmem:[#allocation2 + $0x8] sm:$0xf]  ;;  %v334_v14 = vcombine.high %v326_v8, %v326_v8  ;;  %v354_v15 = vcombine.low %v326_v8, %v326_v8 }
  0x99   : > { %v370_v9 = vld [vmem:[#allocation2 + $0x8] sm:$0xf] }
  0x9a   : > { %v1188_v10 = vld [vmem:[#allocation2 + $0x8] ss:$0 sps:$4 sm:$0xff]  }
  0x9b   : > { %335 = vrot.lane.b32.xlu0 %v326_v8, %s1285_s21  ;;  %v464_v11 = vld [vmem:[#allocation2 + $0x8] sm:$0xf] }
  0x9c   : > { %339 = vrot.lane.b32.xlu1 %v327_v7, %s1285_s21  ;;  %v1189_v12 = vld [vmem:[#allocation2 + $0x8] ss:$0 sps:$4 sm:$0xff]  }
  0x9d   : > { %v420_v13 = vld [vmem:[#allocation2 + $0x8] sm:$0xf] }
  0x9e   : > { %v503_v16 = vld [vmem:[#allocation2 + $0x8] sm:$0xf] }
  0x9f   : > { %468 = vrot.lane.b32.xlu0 %v326_v8, %s1287_s23 }
  0xa0   : > { %382 = vrot.lane.b32.xlu1 %v370_v9, %s1286_s22 }
  0xa3   : > { %360 = vrot.lane.b32.xlu0 %v1188_v10, %s1288_s29 }
  0xa4   : > { %472 = vrot.lane.b32.xlu1 %v464_v11, %s1287_s23 }
  0xa7   : > { %493 = vrot.lane.b32.xlu0 %v1189_v12, %s1290_s9 }
  0xa8   : > { %428 = vrot.lane.b32.xlu1 %v420_v13, %s1289_s8 }
  0xab   : > { %400 = vrot.lane.b32.xlu0 %v334_v14, %s1284_s20 }
  0xac   : > { %398 = vrot.lane.b32.xlu1 %v326_v8, %s1284_s20 }
  0xaf   : > { %337 = vrot.lane.b32.xlu0 %v334_v14, %s1285_s21 }
  0xb0   : > { %358 = vrot.lane.b32.xlu1 %v326_v8, %s1288_s29 }
  0xb3   : > { %380 = vrot.lane.b32.xlu0 %v334_v14, %s1286_s22 }
  0xb4   : > { %378 = vrot.lane.b32.xlu1 %v326_v8, %s1286_s22 }
  0xb7   : > { %356 = vrot.lane.b32.xlu0 %v354_v15, %s1288_s29 }
  0xb8   : > { %442 = vrot.lane.b32.xlu1 %v326_v8, %s1283_s19 }
  0xbb   : > { %470 = vrot.lane.b32.xlu0 %v334_v14, %s1287_s23 }
  0xbc   : > { %491 = vrot.lane.b32.xlu1 %v326_v8, %s1290_s9 }
  0xbf   : > { %426 = vrot.lane.b32.xlu0 %v334_v14, %s1289_s8 }
  0xc0   : > { %444 = vrot.lane.b32.xlu1 %v334_v14, %s1283_s19 }
  0xc3   : > { %489 = vrot.lane.b32.xlu0 %v354_v15, %s1290_s9 }
  0xc4   : > { %424 = vrot.lane.b32.xlu1 %v326_v8, %s1289_s8 }
  0xc7   : > { %511 = vrot.lane.b32.xlu0 %v503_v16, %s1291_s13 }
  0xc8   : > { %509 = vrot.lane.b32.xlu1 %v334_v14, %s1291_s13 }
  0xcb   : > { %536 = vperm.xlu0 %1184, %v533_v17  }
  0xcc   : > { %507 = vrot.lane.b32.xlu1 %v326_v8, %s1291_s13 }
 0x109   : > { %v1428_v19 = vpop.permute.xlu0 %446 }
 0x10a   : > { %v403_v20 = vpop.permute.xlu1 %402 }
 0x10d   : > { %v336_v23 = vpop.permute.xlu0 %335 }
 0x10e   : > { %v340_v22 = vpop.permute.xlu1 %339 }
 0x111   : > { %v469_v26 = vpop.permute.xlu0 %468 }
 0x112   : > { %v383_v25 = vpop.permute.xlu1 %382 }
 0x115   : > { %v361_v29 = vpop.permute.xlu0 %360 }
 0x116   : > { %v473_v28 = vpop.permute.xlu1 %472 }
 0x119   : > { %v494_v33 = vpop.permute.xlu0 %493 }
 0x11a   : > { %v1430_v32 = vpop.permute.xlu1 %428 }
 0x11d   : > { %v401_v37 = vpop.permute.xlu0 %400 }
 0x11e   : > { %v399_v36 = vpop.permute.xlu1 %398  ;;  %v406_v39 = vsel %vm404_vm6, %v401_v37, %v403_v20 }
 0x11f   : > { %v405_v38 = vsel %vm404_vm6, %v399_v36, %v401_v37  ;;  %v410_v41 = vsel %vm1436_vm8, %v406_v39, 0.0 }
 0x120   : > { %v409_v40 = vsel %vm1432_vm7, %v405_v38, 0.0  ;;  %v414_v43 = vrot.slane %v410_v41, 4 }
 0x121   : > { %v413_v42 = vrot.slane %v409_v40, 4  ;;  %v338_v45 = vpop.permute.xlu0 %337 }
 0x122   : > { %v359_v44 = vpop.permute.xlu1 %358  ;;  %418 = vst [vmem:[#allocation4 + $0x18] sm:$0xf0] %v414_v43  ;;  %v342_v47 = vsel %vm341_vm10, %v336_v23, %v338_v45  ;;  %v343_v48 = vsel %vm341_vm10, %v338_v45, %v340_v22  ;;  %v522_v43 = vld [vmem:[%s1661_s1] sm:$0xff] }
 0x123   : > { %417 = vst [vmem:[#allocation4 + $0x10] sm:$0xf0] %v413_v42  ;;  %v364_v46 = vsel %vm362_vm9, %v359_v44, %v361_v29  ;;  %v346_v49 = vsel %vm1432_vm7, %v342_v47, 0.0  ;;  %v347_v50 = vsel %vm1436_vm8, %v343_v48, 0.0  ;;  %v922_v42 = vcombine.high %v1393_v1, %v1393_v1 }
 0x124   : > { %368 = vst [vmem:[#allocation4 + $0x8] sm:$0xf0] %v364_v46  ;;  %348 = vst [vmem:[#allocation4] sm:$0xf] %v346_v49 }
 0x125   : > { %349 = vst [vmem:[#allocation4 + $0x8] sm:$0xf] %v347_v50  ;;  %v381_v54 = vpop.permute.xlu0 %380 }
 0x126   : > { %v379_v53 = vpop.permute.xlu1 %378  ;;  %v386_v56 = vsel %vm384_vm11, %v381_v54, %v383_v25 }
 0x127   : > { %v385_v55 = vsel %vm384_vm11, %v379_v53, %v381_v54  ;;  %v390_v58 = vsel %vm1457_vm13, %v386_v56, 0.0 }
 0x128   : > { %v389_v57 = vsel %vm1453_vm12, %v385_v55, 0.0  ;;  %392 = vst [vmem:[#allocation4 + $0x18] sm:$0xf] %v390_v58  ;;  %v916_v58 = vld [vmem:[%s1666_s6] sm:$0xff] }
 0x129   : > { %391 = vst [vmem:[#allocation4 + $0x10] sm:$0xf] %v389_v57  ;;  %v357_v60 = vpop.permute.xlu0 %356  ;;  %v915_v57 = vld [vmem:[%s1665_s5] sm:$0xff] }
 0x12a   : > { %v443_v59 = vpop.permute.xlu1 %442  ;;  %v363_v61 = vsel %vm362_vm9, %v357_v60, %v359_v44 }
 0x12b   : > { %367 = vst [vmem:[#allocation4] sm:$0xf0] %v363_v61 }
 0x12c   : > { %v524_v7 = vld [vmem:[#allocation4 + $0x8] sm:$0xff] }
 0x12d   : > { %v471_v63 = vpop.permute.xlu0 %470 }
 0x12e   : > { %v492_v62 = vpop.permute.xlu1 %491  ;;  %v475_v3 = vsel %vm474_vm15, %v469_v26, %v471_v63  ;;  %v476_v4 = vsel %vm474_vm15, %v471_v63, %v473_v28 }
 0x12f   : > { %v497_v2 = vsel %vm495_vm14, %v492_v62, %v494_v33  ;;  %v479_v5 = vsel %vm1432_vm7, %v475_v3, 0.0  ;;  %v480_v6 = vsel %vm1436_vm8, %v476_v4, 0.0  ;;  %v526_v8 = vld [vmem:[#allocation4 + $0x18] sm:$0xff] }
 0x130   : > { %501 = vst [vmem:[#allocation4 + $0x38] sm:$0xf0] %v497_v2  ;;  %481 = vst [vmem:[#allocation4 + $0x30] sm:$0xf] %v479_v5  ;;  %v1103_v9 = vpack.c.bf16 %v526_v8, %v524_v7  ;;  %v525_v16 = vld [vmem:[#allocation4 + $0x10] sm:$0xff] }
 0x131   : > { %482 = vst [vmem:[#allocation4 + $0x38] sm:$0xf] %v480_v6  ;;  %v427_v11 = vpop.permute.xlu0 %426 }
 0x132   : > { %v445_v10 = vpop.permute.xlu1 %444  ;;  %v432_v14 = vsel %vm430_vm1, %v427_v11, %v1430_v32  ;;  %1104 = vmatprep.subr.bf16.mxu0 %v1103_v9  ;;  %v523_v15 = vld [vmem:[#allocation4] sm:$0xff] }
 0x133   : > { %v449_v12 = vsel %vm448_vm0, %v443_v59, %v445_v10  ;;  %v450_v13 = vsel %vm448_vm0, %v445_v10, %v1428_v19  ;;  %436 = vst [vmem:[#allocation4 + $0x28] sm:$0xf] %v432_v14  ;;  %v1105_v20 = vpack.c.bf16 %v525_v16, %v523_v15  ;;  %v834_v59 = vld [vmem:[%s1664_s4] sm:$0xff] }
 0x134   : > { %v453_v17 = vsel %vm1453_vm12, %v449_v12, 0.0  ;;  %v454_v18 = vsel %vm1457_vm13, %v450_v13, 0.0 }
 0x135   : > { %v457_v21 = vrot.slane %v453_v17, 4  ;;  %v458_v22 = vrot.slane %v454_v18, 4  ;;  %1106 = vmatpush1.bf16.msra.mxu0 %v1105_v20  ;;  %v490_v24 = vpop.permute.xlu0 %489 }
 0x136   : > { %v425_v23 = vpop.permute.xlu1 %424  ;;  %v496_v25 = vsel %vm495_vm14, %v490_v24, %v492_v62 }
 0x137   : > { %461 = vst [vmem:[#allocation4 + $0x20] sm:$0xf0] %v457_v21  ;;  %462 = vst [vmem:[#allocation4 + $0x28] sm:$0xf0] %v458_v22  ;;  %v431_v19 = vsel %vm430_vm1, %v425_v23, %v427_v11 }
 0x138   : > { %435 = vst [vmem:[#allocation4 + $0x20] sm:$0xf] %v431_v19  ;;  %500 = vst [vmem:[#allocation4 + $0x30] sm:$0xf0] %v496_v25  ;;  %v530_v32 = vld [vmem:[#allocation4 + $0x38] sm:$0xff] }
 0x139   : > { %v512_v27 = vpop.permute.xlu0 %511 }
 0x13a   : > { %v510_v26 = vpop.permute.xlu1 %509 }
 0x13b   : > { %v515_v28 = vsel %vm1668_vm2, %v510_v26, %v512_v27 }
 0x13c   : > { %v519_v29 = vsel %vm1457_vm13, %v515_v28, 0.0 }
 0x13d   : > { %521 = vst [vmem:[#allocation4 + $0x48] sm:$0xf] %v519_v29 }
 0x13e   : > { %v508_v30 = vpop.permute.xlu1 %507  ;;  %v528_v31 = vld [vmem:[#allocation4 + $0x28] sm:$0xff] }
 0x13f   : > { %v514_v33 = vsel %vm1668_vm2, %v508_v30, %v510_v26  ;;  %v1107_v36 = vpack.c.bf16 %v530_v32, %v528_v31  ;;  %v527_v37 = vld [vmem:[#allocation4 + $0x20] sm:$0xff]  ;;  %v529_v38 = vld [vmem:[#allocation4 + $0x30] sm:$0xff]  ;;  %vm625_vm2 = vcmask 523264  }
 0x140   : > { %v518_v39 = vsel %vm1453_vm12, %v514_v33, 0.0  ;;  %v1109_v40 = vpack.c.bf16 %v529_v38, %v527_v37  ;;  %626 = vst.msk [vmem:[#allocation3 + $0x10] sm:$0xff] %vm625_vm2, %v1281_v0  ;;  %vm1200_vm2 = vmpackc.low %vm1432_vm7, %vm1453_vm12 }
 0x141   : > { %520 = vst [vmem:[#allocation4 + $0x40] sm:$0xf] %v518_v39  ;;  %1108 = vmatprep.subr.bf16.mxu0 %v1107_v36 }
 0x142   : > { %1110 = vmatpush1.bf16.msra.mxu0 %v1109_v40 }
 0x144   : > { %v532_v41 = vld [vmem:[#allocation4 + $0x48] sm:$0xf] }
 0x145   : > { %1089 = vmatprep.subr.msk.mxu0 %vm543_vm4, %v532_v41 }
 0x148   : > { %v531_v44 = vld [vmem:[#allocation4 + $0x40] sm:$0xf] }
 0x149   : > { %1090 = vmatpush1.msk.msra.mxu0 %vm543_vm4, %v531_v44 }
 0x14a   : > { %1091 = vmatmul.mubr.msk.f32.vlgmr.msra.gmra.mrb[0].mxu0 %vm539_vm5, %v522_v43  ;;  %1093 = vmatprep.subr.msk.mxu0 %vm543_vm4, %v922_v42  ;;  %v537_v45 = vpop.permute.xlu0 %536  ;;  %vm637_vm5 = vcmask 1047808  }
 0x14b   : > { %1094 = vmatpush1.msk.msra.mxu0 %vm543_vm4, %v1393_v1  ;;  %995 = vmatprep.mubr.f32.mxu0 %v1281_v0 }
 0x21d   : > { %v616_v46 = vpop.f32.mrb[0].mxu0 }
 0x21e   : > { %v617_v47 = vadd.f32 %v616_v46, %v537_v45  ;;  %v618_v48 = vpop.f32.mrb[1].mxu0 }
 0x21f   : > { %v619_v50 = vadd.f32 %v618_v48, %v537_v45 }
 0x220   : > { %v621_v49 = vmax.f32 %v617_v47, 0.0 }
 0x221   : > { %v622_v53 = vmax.f32 %v619_v50, 0.0 }
 0x222   : > { %629 = vrot.lane.b32.xlu1 %v621_v49, %s1282_s18 }
 0x226   : > { %631 = vrot.lane.b32.xlu1 %v622_v53, %s1282_s18 }
 0x294   : > { %v630_v54 = vpop.permute.xlu1 %629 }
 0x295   : > { %638 = vst.msk [vmem:[#allocation3] sm:$0xff] %vm637_vm5, %v630_v54 }
 0x298   : > { %v632_v1 = vpop.permute.xlu1 %631 }
 0x299   : > { %v633_v55 = vsel %vm316_vm3, %v630_v54, %v632_v1  ;;  %640 = vst.msk [vmem:[#allocation3 + $0x10] sm:$0xff] %vm316_vm3, %v632_v1  ;;  %vm923_vm3 = vcmask 31744  }
 0x29a   : > { %1095 = vmatmul.mubr.msk.f32.vlgmr.msra.gmra.mrb[2].mxu0 %vm923_vm3, %v915_v57 }
 0x29c   : > { %v661_v0 = vld [vmem:[#allocation3] sm:$0xff] }
 0x29d   : > { %667 = vrot.lane.b32.xlu1 %v661_v0, %s1288_s29  ;;  %647 = vrot.lane.b32.xlu0 %v661_v0, %s1285_s21 }
 0x2a0   : > { %v643_v56 = vld [vmem:[#allocation3 + $0x10] sm:$0xff] }
 0x2a1   : > { %705 = vrot.lane.b32.xlu1 %v661_v0, %s1284_s20  ;;  %685 = vrot.lane.b32.xlu0 %v661_v0, %s1286_s22 }
 0x2a5   : > { %743 = vrot.lane.b32.xlu0 %v661_v0, %s1283_s19  ;;  %651 = vrot.lane.b32.xlu1 %v643_v56, %s1285_s21 }
 0x2a9   : > { %671 = vrot.lane.b32.xlu0 %v643_v56, %s1288_s29  ;;  %689 = vrot.lane.b32.xlu1 %v643_v56, %s1286_s22 }
 0x2ad   : > { %709 = vrot.lane.b32.xlu1 %v643_v56, %s1284_s20  ;;  %649 = vrot.lane.b32.xlu0 %v633_v55, %s1285_s21  ;;  %s1618_s21 = scalar_lea.hbm %s1667_s7, %s1102_s14 }
 0x2b1   : > { %747 = vrot.lane.b32.xlu1 %v643_v56, %s1283_s19  ;;  %763 = vrot.lane.b32.xlu0 %v661_v0, %s1287_s23 }
 0x2b5   : > { %729 = vrot.lane.b32.xlu1 %v643_v56, %s1289_s8  ;;  %787 = vrot.lane.b32.xlu0 %v643_v56, %s1290_s9 }
 0x2b9   : > { %669 = vrot.lane.b32.xlu1 %v633_v55, %s1288_s29  ;;  %687 = vrot.lane.b32.xlu0 %v633_v55, %s1286_s22  ;;  %s1221_s22 = sshll.u32 %s1294_s28, 4  ;;  %s1222_s22 = int_to_ptr.vmem [resolvable:$false] %s1221_s22 }
 0x2ba   : > { %s1223_s29 = scalar_lea.vmem %s1222_s22, 512 }
 0x2bd   : > { %725 = vrot.lane.b32.xlu1 %v661_v0, %s1289_s8  ;;  %707 = vrot.lane.b32.xlu0 %v633_v55, %s1284_s20 }
 0x2c1   : > { %767 = vrot.lane.b32.xlu1 %v643_v56, %s1287_s23  ;;  %745 = vrot.lane.b32.xlu0 %v633_v55, %s1283_s19 }
 0x2c5   : > { %785 = vrot.lane.b32.xlu1 %v633_v55, %s1290_s9  ;;  %727 = vrot.lane.b32.xlu0 %v633_v55, %s1289_s8 }
 0x2c9   : > { %783 = vrot.lane.b32.xlu1 %v661_v0, %s1290_s9  ;;  %765 = vrot.lane.b32.xlu0 %v633_v55, %s1287_s23  ;;  %s269_s9 = sand.u32 1, %s1271_s25  }
 0x2ca   : > { %s1009_s19 = scalar_lea.sflag [#allocation6], %s269_s9 }
 0x2cd   : > { %805 = vrot.lane.b32.xlu1 %v643_v56, %s1291_s13  ;;  %803 = vrot.lane.b32.xlu0 %v633_v55, %s1291_s13 }
 0x2d1   : > { %801 = vrot.lane.b32.xlu0 %v661_v0, %s1291_s13  ;;  %837 = vperm.xlu1 %1185, %v834_v59   ;;  %v815_v59 = vld [vmem:[%s1663_s3] sm:$0xff]  ;;  %s1086_s13 = sshll.u32 %s269_s9, 4 }
 0x2d2   : > { %s271_s15 = scalar_lea.vmem [#allocation5], %s1086_s13 }
 0x2d3   : > { %s1023_s16 = sshll.u32 %s271_s15, 4  ;;  %s1620_s16 = int_to_ptr.vmem [resolvable:$true] %s1023_s16 }
 0x2d4   : > { %s1217_s20 = scalar_lea.vmem %s1620_s16, 256  ;;  %p1224_p0 = scmp.lt.s32.totalorder %s1620_s16, %s1222_s22 }
 0x2d5   : > { %919 = vperm.xlu0 %1184, %v916_v58   ;;  %p1218_p11 = scmp.ne.s32.totalorder %s1620_s16, %s1217_s20  ;;  %p1225_p1 = scmp.lt.s32.totalorder %s1223_s29, %s1217_s20 }
 0x2d7   : > { %p1219_p12 = pnand %p1218_p11, %p1373_p5  ;;  %p1226_p2 = por %p1225_p1, %p1224_p0 }
 0x2d9   : > { %p1220_p13 = pneg %p1219_p12 }
 0x2db   : > { %p1227_p3 = pnand %p1226_p2, %p1220_p13 }
 0x30f   : > { %v648_v60 = vpop.permute.xlu0 %647  ;;  %v668_v61 = vpop.permute.xlu1 %667 }
 0x313   : > { %v686_v62 = vpop.permute.xlu0 %685  ;;  %v706_v63 = vpop.permute.xlu1 %705 }
 0x317   : > { %v744_v2 = vpop.permute.xlu0 %743  ;;  %v652_v3 = vpop.permute.xlu1 %651 }
 0x31b   : > { %v672_v4 = vpop.permute.xlu0 %671  ;;  %v690_v5 = vpop.permute.xlu1 %689 }
 0x31f   : > { %v650_v6 = vpop.permute.xlu0 %649  ;;  %v710_v7 = vpop.permute.xlu1 %709 }
 0x320   : > { %v653_v8 = vsel %vm341_vm10, %v648_v60, %v650_v6  ;;  %v654_v9 = vsel %vm341_vm10, %v650_v6, %v652_v3  ;;  %vm1293_vm10 = vmmov 1  }
 0x321   : > { %v657_v10 = vsel %vm1432_vm7, %v653_v8, 0.0  ;;  %v658_v11 = vsel %vm1436_vm8, %v654_v9, 0.0 }
 0x322   : > { %659 = vst [vmem:[#allocation4] sm:$0xff] %v657_v10  ;;  %660 = vst [vmem:[#allocation4 + $0x8] sm:$0xff] %v658_v11 }
 0x323   : > { %v764_v12 = vpop.permute.xlu0 %763  ;;  %v748_v13 = vpop.permute.xlu1 %747 }
 0x327   : > { %v788_v14 = vpop.permute.xlu0 %787  ;;  %v730_v15 = vpop.permute.xlu1 %729 }
 0x32b   : > { %v688_v16 = vpop.permute.xlu0 %687  ;;  %v670_v17 = vpop.permute.xlu1 %669 }
 0x32c   : > { %v691_v18 = vsel %vm384_vm11, %v686_v62, %v688_v16  ;;  %v692_v20 = vsel %vm384_vm11, %v688_v16, %v690_v5  ;;  %v673_v21 = vsel %vm362_vm9, %v668_v61, %v670_v17  ;;  %v674_v22 = vsel %vm362_vm9, %v670_v17, %v672_v4  ;;  %vm1557_vm11 = vmpackc.low %vm1293_vm10, %vm1436_vm8 }
 0x32d   : > { %v695_v23 = vsel %vm1453_vm12, %v691_v18, 0.0  ;;  %v696_v24 = vsel %vm1457_vm13, %v692_v20, 0.0  ;;  %677 = vst [vmem:[#allocation4 + $0x10] sm:$0xff] %v673_v21  ;;  %678 = vst [vmem:[#allocation4 + $0x18] sm:$0xff] %v674_v22  ;;  %v1192_v27 = vpack.c.bf16 %v674_v22, %v654_v9  ;;  %v1195_v31 = vpack.c.bf16 %v673_v21, %v653_v8 }
 0x32e   : > { %697 = vst [vmem:[#allocation4 + $0x20] sm:$0xff] %v695_v23  ;;  %698 = vst [vmem:[#allocation4 + $0x28] sm:$0xff] %v696_v24 }
 0x32f   : > { %v708_v19 = vpop.permute.xlu0 %707  ;;  %v726_v25 = vpop.permute.xlu1 %725  ;;  %1193 = vmatprep.subr.msk.bf16.mxu1 %vm1557_vm11, %v1192_v27  ;;  %vm1568_vm9 = vmpackc.low %vm1293_vm10, %vm1432_vm7 }
 0x330   : > { %v711_v28 = vsel %vm404_vm6, %v706_v63, %v708_v19  ;;  %v712_v29 = vsel %vm404_vm6, %v708_v19, %v710_v7  ;;  %1196 = vmatpush1.bf16.msk.msra.mxu1 %vm1568_vm9, %v1195_v31  ;;  %vm1197_vm6 = vmpackc.low %vm1436_vm8, %vm1457_vm13 }
 0x331   : > { %v715_v32 = vsel %vm1432_vm7, %v711_v28, 0.0  ;;  %v716_v33 = vsel %vm1436_vm8, %v712_v29, 0.0  ;;  %v1198_v40 = vpack.c.bf16 %v712_v29, %v692_v20  ;;  %v1201_v41 = vpack.c.bf16 %v711_v28, %v691_v18  ;;  %vm1203_vm8 = vmpackc.low %vm1457_vm13, %vm1293_vm10 }
 0x332   : > { %717 = vst [vmem:[#allocation4 + $0x30] sm:$0xff] %v715_v32  ;;  %718 = vst [vmem:[#allocation4 + $0x38] sm:$0xff] %v716_v33 }
 0x333   : > { %v746_v36 = vpop.permute.xlu0 %745  ;;  %v768_v37 = vpop.permute.xlu1 %767  ;;  %1199 = vmatprep.subr.msk.bf16.mxu1 %vm1197_vm6, %v1198_v40  ;;  %vm1206_vm7 = vmpackc.low %vm1453_vm12, %vm1293_vm10 }
 0x334   : > { %v749_v38 = vsel %vm448_vm0, %v744_v2, %v746_v36  ;;  %v750_v39 = vsel %vm448_vm0, %v746_v36, %v748_v13  ;;  %1202 = vmatpush1.bf16.msk.msra.mxu1 %vm1200_vm2, %v1201_v41  ;;  %vm1683_vm0 = vcmask 646144  }
 0x337   : > { %v728_v42 = vpop.permute.xlu0 %727  ;;  %v786_v43 = vpop.permute.xlu1 %785 }
 0x338   : > { %v731_v44 = vsel %vm430_vm1, %v726_v25, %v728_v42  ;;  %v732_v45 = vsel %vm430_vm1, %v728_v42, %v730_v15  ;;  %v790_v46 = vsel %vm495_vm14, %v786_v43, %v788_v14 }
 0x339   : > { %735 = vst [vmem:[#allocation4 + $0x40] sm:$0xff] %v731_v44  ;;  %736 = vst [vmem:[#allocation4 + $0x48] sm:$0xff] %v732_v45  ;;  %v1204_v34 = vpack.c.bf16 %v750_v39, %v732_v45  ;;  %v1207_v53 = vpack.c.bf16 %v749_v38, %v731_v44 }
 0x33b   : > { %v766_v35 = vpop.permute.xlu0 %765  ;;  %v784_v47 = vpop.permute.xlu1 %783  ;;  %1205 = vmatprep.subr.msk.bf16.mxu1 %vm1203_vm8, %v1204_v34 }
 0x33c   : > { %v769_v48 = vsel %vm474_vm15, %v764_v12, %v766_v35  ;;  %v770_v49 = vsel %vm474_vm15, %v766_v35, %v768_v37  ;;  %v789_v50 = vsel %vm495_vm14, %v784_v47, %v786_v43  ;;  %1208 = vmatpush1.bf16.msk.msra.mxu1 %vm1206_vm7, %v1207_v53  ;;  %vm1684_vm14 = vmmov %vm1683_vm0  ;;  %vm840_vm15 = vcmask 588800  }
 0x33d   : > { %v1210_v0 = vpack.c.bf16 %v790_v46, %v770_v49  ;;  %v1213_v56 = vpack.c.bf16 %v789_v50, %v769_v48 }
 0x33f   : > { %v804_v54 = vpop.permute.xlu0 %803  ;;  %v806_v1 = vpop.permute.xlu1 %805  ;;  %1211 = vmatprep.subr.msk.bf16.mxu1 %vm1557_vm11, %v1210_v0 }
 0x340   : > { %v808_v55 = vsel %vm1683_vm0, %v804_v54, %v806_v1  ;;  %1214 = vmatpush1.bf16.msk.msra.mxu1 %vm1568_vm9, %v1213_v56 }
 0x341   : > { %1215 = vmatprep.subr.msk.mxu1 %vm1457_vm13, %v808_v55 }
 0x343   : > { %v802_v57 = vpop.permute.xlu0 %801 }
 0x344   : > { %v807_v58 = vsel %vm1684_vm14, %v802_v57, %v804_v54 }
 0x345   : > { %1216 = vmatpush1.msk.msra.mxu1 %vm1453_vm12, %v807_v58 }
 0x346   : > { %1092 = vmatmul.mubr.msk.f32.vlgmr.msra.gmra.mrb[0].mxu1 %vm840_vm15, %v815_v59 }
 0x350   : > { %v838_v62 = vpop.permute.xlu1 %837 }
 0x354   : > { %v920_v3 = vpop.permute.xlu0 %919 }
 0x36d   : > { %v997_v60 = vpop.f32.mrb[2].mxu0 }
 0x36e   : > { %v999_v61 = vpop.f32.mrb[3].mxu0 }
 0x419   : > { %v910_v52 = vpop.f32.mrb[0].mxu1 }
 0x41a   : > { %v911_v63 = vadd.f32 %v910_v52, %v838_v62  ;;  %v912_v2 = vpop.f32.mrb[1].mxu1 }
 0x41b   : > { %v913_v4 = vadd.f32 %v912_v2, %v838_v62 }
 0x41c   : > { %v1128_v5 = vadd.f32 %v920_v3, %v911_v63 }
 0x41d   : > { %v1131_v6 = vadd.f32 %v920_v3, %v913_v4 }
 0x41e   : > { %v1129_v7 = vadd.f32 %v1128_v5, %v997_v60 }
 0x41f   : > { %v1132_v51 = vadd.f32 %v1131_v6, %v999_v61 }
 0x420   : > { %v1004_v8 = vmax.f32 %v1129_v7, 0.0 }
 0x421   : > { %v1005_v9 = vmax.f32 %v1132_v51, 0.0 }
 0x422   : > { %1006 = vst [vmem:[%s271_s15] sm:$0xff] %v1004_v8 }
 0x423   : > { %1007 = vst [vmem:[%s271_s15 + $0x8] sm:$0xff] %v1005_v9 }
 0x424   : > { %1230 = shalt.err (!%p1227_p3)
}
 0x425   : > { %s1231_s23 = scalar_lea.hbm %s1618_s21, 256  ;;  %s1235_s13 = scalar_lea.hbm %s1667_s7, 512 }
 0x426   : > { %p1232_p4 = scmp.ne.s32.totalorder %s1618_s21, %s1231_s23  ;;  %p1236_p9 = scmp.lt.u32.totalorder %s1618_s21, %s1667_s7 }
 0x427   : > { %p1237_p10 = scmp.lt.u32.totalorder %s1235_s13, %s1231_s23  ;;  %p1239_p12 = scmp.lt.u32.totalorder %s1231_s23, %s1618_s21 }
 0x428   : > { %p1233_p7 = pnand %p1232_p4, %p1373_p5 }
 0x429   : > { %p1238_p11 = por %p1237_p10, %p1236_p9 }
 0x42a   : > { %p1234_p8 = pneg %p1233_p7 }
 0x42b   : > { %p1240_p13 = por %p1239_p12, %p1238_p11 }
 0x42d   : > { %p1241_p0 = pnand %p1240_p13, %p1234_p8 }
 0x42f   : > { %1244 = shalt.err (!%p1241_p0)
}
 0x430   : > { %1133 = dma.vmem_to_hbm [thread:$0]  (%p1373_p5), %s1620_s16, 256, %s1618_s21, %s1009_s19  }
 0x431 PF: > { %p1139_p1 = scmp.ge.s32.totalorder %s1279_s27, 2  ;;  %s1035_s17 = sand.u32 1, %s1267_s24  }
 0x432   : > { %s1036_s18 = scalar_lea.sflag [#allocation6], %s1035_s17 }
 0x433   : > { %p1136_p2 = pnand %p1139_p1, %p1377_p6 }
 0x435   : > { %1262 = dma.done.wait (!%p1136_p2), %s1036_s18, 256  }
 0x436   : > { %1264 = vsyncadd (!%p1136_p2), %s1036_s18, 4294967040  ;;  %p17_p3 = scmp.ge.s32.totalorder %s1360_s30, 4   ;;  %s1685_s24 = smov %s1271_s25 }
 0x437   : > { %s1686_s25 = smov %s1275_s26  ;;  %s1687_s26 = smov %s1371_s10 }
 0x438   : > { %s1688_s27 = smov %s1360_s30  ;;  %19 = sbr.rel (!%p17_p3) target bundleno = 3 (0x3), region = 83 }
 0x43f   :  { %1041 = vsyncpa [#allocation6], 1 }
 0x440   :  { %1043 = vsyncpa [#allocation6 + $0x1], 1 }

</bundles_post_ra>
